<compile_context>
chip_gen: v5e
topology: v5e:2x2
jax: 0.10.0
libtpu: 0.0.40
codegen_flags: <defaults>
</compile_context>

<pallas_src>
import jax
import jax.numpy as jnp
from jax.experimental import pallas as pl
from jax.experimental.pallas import tpu as pltpu

_EPS = 1e-10
_LANES = 128
_VMEM_LIMIT = 32 * 1024 * 1024          # safe on all of v5e / v6e / v7x
_TILE_TARGET_BYTES = 2 * 1024 * 1024    # per input tile, *padded* bytes
_GRID_STEPS_TARGET = 8                  # aim for >= 8 steps on large inputs


def _round_up(x, m):
    return (x + m - 1) // m * m


def _sublane_align(itemsize):
    # f32 -> 8 rows, bf16/f16 -> 16 rows, int8/fp8 -> 32 rows per vreg sublane tile.
    return {4: 8, 2: 16, 1: 32}.get(int(itemsize), 8)


# ---------------------------------------------------------------------------
# Kernels
# ---------------------------------------------------------------------------

def _js_kernel_lanes(p_ref, q_ref, o_ref):
    """Lane-packed layout: p_ref/q_ref are (C, TILE_N); o_ref is (1, TILE_N)."""
    p = p_ref[...].astype(jnp.float32)
    q = q_ref[...].astype(jnp.float32)
    m = 0.5 * (p + q)
    log_m = jnp.log(m + _EPS)                       # shared by both KL terms
    js = p * (jnp.log(p + _EPS) - log_m) + q * (jnp.log(q + _EPS) - log_m)
    o_ref[...] = 0.5 * jnp.sum(js, axis=0, keepdims=True)   # single fused reduce


def _js_kernel_rows(p_ref, q_ref, o_ref):
    """Row-tiled layout: p_ref/q_ref are (TILE_ROWS, C); o_ref is (TILE_ROWS, 1)."""
    p = p_ref[...].astype(jnp.float32)
    q = q_ref[...].astype(jnp.float32)
    m = 0.5 * (p + q)
    log_m = jnp.log(m + _EPS)
    js = p * (jnp.log(p + _EPS) - log_m) + q * (jnp.log(q + _EPS) - log_m)
    o_ref[...] = 0.5 * jnp.sum(js, axis=1, keepdims=True)


# ---------------------------------------------------------------------------
# Tile sizing (padded-byte aware)
# ---------------------------------------------------------------------------

def _pick_tile_lanes(N, C, itemsize):
    """TILE_N (multiple of 128) for the (C, N) lane-packed layout."""
    c_pad = _round_up(C, _sublane_align(itemsize))
    # 2 inputs x 2 pipeline buffers of this padded tile must stay well under the
    # scoped-VMEM limit (and leave room for in-kernel f32 temporaries).
    max_tile = max(_LANES, (_TILE_TARGET_BYTES // (c_pad * itemsize)) // _LANES * _LANES)
    n128 = _round_up(N, _LANES)
    steps_tile = max(_LANES, _round_up(pl.cdiv(n128, _GRID_STEPS_TARGET), _LANES))
    return min(max_tile, steps_tile, n128)


def _pick_tile_rows(N, C, itemsize):
    """TILE_ROWS (multiple of sublane alignment) for the (N, C) row-tiled layout."""
    sub = _sublane_align(itemsize)
    c_pad_lanes = _round_up(C, _LANES)              # lane dim pads to 128 in VMEM
    max_rows = max(sub, (_TILE_TARGET_BYTES // (c_pad_lanes * itemsize)) // sub * sub)
    n_sub = _round_up(N, sub)
    steps_rows = max(sub, _round_up(pl.cdiv(n_sub, _GRID_STEPS_TARGET), sub))
    return min(max_rows, steps_rows, n_sub)


# ---------------------------------------------------------------------------
# Wrappers
# ---------------------------------------------------------------------------

def _js_lane_packed(p, q, tile_n):
    N, C = p.shape
    itemsize = jnp.dtype(p.dtype).itemsize
    if tile_n is None:
        tile_n = _pick_tile_lanes(N, C, itemsize)
    tile_n = max(_LANES, _round_up(int(tile_n), _LANES))
    n_pad = _round_up(N, tile_n)

    # Present the batch axis on lanes.  For C < 128 the (N, C) HBM layout is
    # lane-padded anyway, so this relayout does not add meaningful HBM traffic
    # relative to the padding it removes from the kernel's working set.
    pt = jnp.transpose(p)
    qt = jnp.transpose(q)
    if n_pad != N:
        # Zero padding: p = q = 0 -> contribution is exactly 0; sliced off below.
        pt = jnp.pad(pt, ((0, 0), (0, n_pad - N)))
        qt = jnp.pad(qt, ((0, 0), (0, n_pad - N)))

    out = pl.pallas_call(
        _js_kernel_lanes,
        out_shape=jax.ShapeDtypeStruct((1, n_pad), jnp.float32),
        grid_spec=pltpu.PrefetchScalarGridSpec(
            num_scalar_prefetch=0,
            grid=(n_pad // tile_n,),
            in_specs=[
                pl.BlockSpec((C, tile_n), lambda i: (0, i)),
                pl.BlockSpec((C, tile_n), lambda i: (0, i)),
            ],
            out_specs=pl.BlockSpec((1, tile_n), lambda i: (0, i)),
        ),
        compiler_params=pltpu.CompilerParams(
            dimension_semantics=("parallel",),
            vmem_limit_bytes=_VMEM_LIMIT,
        ),
    )(pt, qt)
    return out[0, :N]


def _js_row_tiled(p, q, tile_rows):
    N, C = p.shape
    itemsize = jnp.dtype(p.dtype).itemsize
    sub = _sublane_align(itemsize)
    if tile_rows is None:
        tile_rows = _pick_tile_rows(N, C, itemsize)
    tile_rows = max(sub, _round_up(int(tile_rows), sub))
    n_pad = _round_up(N, tile_rows)
    if n_pad != N:
        p = jnp.pad(p, ((0, n_pad - N), (0, 0)))
        q = jnp.pad(q, ((0, n_pad - N), (0, 0)))

    out = pl.pallas_call(
        _js_kernel_rows,
        out_shape=jax.ShapeDtypeStruct((n_pad, 1), jnp.float32),
        grid_spec=pltpu.PrefetchScalarGridSpec(
            num_scalar_prefetch=0,
            grid=(n_pad // tile_rows,),
            in_specs=[
                pl.BlockSpec((tile_rows, C), lambda i: (i, 0)),
                pl.BlockSpec((tile_rows, C), lambda i: (i, 0)),
            ],
            out_specs=pl.BlockSpec((tile_rows, 1), lambda i: (i, 0)),
        ),
        compiler_params=pltpu.CompilerParams(
            dimension_semantics=("parallel",),
            vmem_limit_bytes=_VMEM_LIMIT,
        ),
    )(p, q)
    return out[:N, 0]


def jensen_shannon(p, q, *, tile=None, lane_pack=None):
    """Row-wise Jensen-Shannon divergence.  p, q: (N, C) -> (N,) float32."""
    assert p.shape == q.shape and p.ndim == 2, (p.shape, q.shape)
    _, C = p.shape
    if lane_pack is None:
        lane_pack = C <= 64      # CIFAR-style small class counts -> lane-pack N
    if lane_pack:
        return _js_lane_packed(p, q, tile)
    return _js_row_tiled(p, q, tile)


def jensen_shannon_ref(p, q):
    """Pure-JAX reference matching the PyTorch module."""
    p = p.astype(jnp.float32)
    q = q.astype(jnp.float32)
    m = (p + q) / 2.0
    kl = lambda a, b: jnp.sum(a * jnp.log((a + _EPS) / (b + _EPS)), axis=1)
    return 0.5 * kl(p, m) + 0.5 * kl(q, m)


if __name__ == "__main__":
    key = jax.random.PRNGKey(0)
    k1, k2, k3, k4, k5, k6 = jax.random.split(key, 6)

    # Case 1: CIFAR-10-like, f32, lane-packed path (N on lanes, C=10 on sublanes).
    N, C = 128, 10
    p = jax.nn.softmax(jax.random.normal(k1, (N, C), dtype=jnp.float32), axis=1)
    q = jax.nn.softmax(jax.random.normal(k2, (N, C), dtype=jnp.float32), axis=1)
    out = jax.block_until_ready(jensen_shannon(p, q))
    ref = jensen_shannon_ref(p, q)
    assert out.shape == (N,)
    assert jnp.allclose(out, ref, atol=1e-5, rtol=1e-5), (out, ref)

    # Case 2: non-multiple batch + bf16 inputs -> wrapper padding, multi-step grid,
    # native-width streaming with in-kernel f32 upcast (lane-packed path).
    N2, C2 = 200, 10
    p2 = jax.nn.softmax(jax.random.normal(k3, (N2, C2)), axis=1).astype(jnp.bfloat16)
    q2 = jax.nn.softmax(jax.random.normal(k4, (N2, C2)), axis=1).astype(jnp.bfloat16)
    out2 = jax.block_until_ready(jensen_shannon(p2, q2, tile=128))
    ref2 = jensen_shannon_ref(p2, q2)
    assert out2.shape == (N2,)
    assert jnp.allclose(out2, ref2, atol=1e-5, rtol=1e-4), (out2, ref2)

    # Case 3: larger C -> row-tiled path (lanes already dense, multi-step grid).
    N3, C3 = 32, 256
    p3 = jax.nn.softmax(jax.random.normal(k5, (N3, C3), dtype=jnp.float32), axis=1)
    q3 = jax.nn.softmax(jax.random.normal(k6, (N3, C3), dtype=jnp.float32), axis=1)
    out3 = jax.block_until_ready(jensen_shannon(p3, q3))
    ref3 = jensen_shannon_ref(p3, q3)
    assert out3.shape == (N3,)
    assert jnp.allclose(out3, ref3, atol=1e-5, rtol=1e-5), (out3, ref3)

    print("KERNEL_OK")
</pallas_src>

<mosaic_0001>
module attributes {stable_mosaic.version = 11 : i64} {
  func.func @_js_kernel_lanes(%arg0: i32, %arg1: memref<10x128xf32, #tpu.memory_space<vmem>>, %arg2: memref<10x128xf32, #tpu.memory_space<vmem>>, %arg3: memref<1x128xf32, #tpu.memory_space<vmem>>) attributes {dimension_semantics = [#tpu.dimension_semantics<parallel>], iteration_bounds = array<i64: 1>, scalar_prefetch = 0 : i64, scratch_operands = 0 : i64, tpu.core_type = #tpu.core_type<tc>, window_params = [{transform_indices = @transform_0, window_bounds = array<i64: 10, 128>}, {transform_indices = @transform_1, window_bounds = array<i64: 10, 128>}, {transform_indices = @transform_2, window_bounds = array<i64: 1, 128>}]} {
    %c0 = arith.constant 0 : index
    %c0_0 = arith.constant 0 : index
    %0 = vector.load %arg1[%c0, %c0_0] : memref<10x128xf32, #tpu.memory_space<vmem>>, vector<10x128xf32>
    %c0_1 = arith.constant 0 : index
    %c0_2 = arith.constant 0 : index
    %1 = vector.load %arg2[%c0_1, %c0_2] : memref<10x128xf32, #tpu.memory_space<vmem>>, vector<10x128xf32>
    %2 = arith.addf %0, %1 : vector<10x128xf32>
    %cst = arith.constant 5.000000e-01 : f32
    %3 = vector.broadcast %cst : f32 to vector<10x128xf32>
    %4 = arith.mulf %3, %2 : vector<10x128xf32>
    %cst_3 = arith.constant 1.000000e-10 : f32
    %5 = vector.broadcast %cst_3 : f32 to vector<10x128xf32>
    %6 = arith.addf %4, %5 : vector<10x128xf32>
    %7 = math.log %6 : vector<10x128xf32>
    %cst_4 = arith.constant 1.000000e-10 : f32
    %8 = vector.broadcast %cst_4 : f32 to vector<10x128xf32>
    %9 = arith.addf %0, %8 : vector<10x128xf32>
    %10 = math.log %9 : vector<10x128xf32>
    %11 = arith.subf %10, %7 : vector<10x128xf32>
    %12 = arith.mulf %0, %11 : vector<10x128xf32>
    %cst_5 = arith.constant 1.000000e-10 : f32
    %13 = vector.broadcast %cst_5 : f32 to vector<10x128xf32>
    %14 = arith.addf %1, %13 : vector<10x128xf32>
    %15 = math.log %14 : vector<10x128xf32>
    %16 = arith.subf %15, %7 : vector<10x128xf32>
    %17 = arith.mulf %1, %16 : vector<10x128xf32>
    %18 = arith.addf %12, %17 : vector<10x128xf32>
    %cst_6 = arith.constant dense<0.000000e+00> : vector<128xf32>
    %19 = vector.multi_reduction <add>, %18, %cst_6 [0] : vector<10x128xf32> to vector<128xf32>
    %20 = vector.shape_cast %19 : vector<128xf32> to vector<1x128xf32>
    %cst_7 = arith.constant 5.000000e-01 : f32
    %21 = vector.broadcast %cst_7 : f32 to vector<1x128xf32>
    %22 = arith.mulf %21, %20 : vector<1x128xf32>
    %c0_8 = arith.constant 0 : index
    %c0_9 = arith.constant 0 : index
    %23 = vector.load %arg3[%c0_8, %c0_9] : memref<1x128xf32, #tpu.memory_space<vmem>>, vector<1x128xf32>
    tpu.vector_store %arg3[%c0_8, %c0_9], %22 {strides = array<i32>} : memref<1x128xf32, #tpu.memory_space<vmem>>, vector<1x128xf32>,
    return
  }
  func.func @transform_0(%arg0: i32) -> (i32, i32) {
    %c0_i32 = arith.constant 0 : i32
    %c0_i32_0 = arith.constant 0 : i32
    return %c0_i32, %arg0 : i32, i32
  }
  func.func @transform_1(%arg0: i32) -> (i32, i32) {
    %c0_i32 = arith.constant 0 : i32
    %c0_i32_0 = arith.constant 0 : i32
    return %c0_i32, %arg0 : i32, i32
  }
  func.func @transform_2(%arg0: i32) -> (i32, i32) {
    %c0_i32 = arith.constant 0 : i32
    %c0_i32_0 = arith.constant 0 : i32
    return %c0_i32, %arg0 : i32, i32
  }
}

</mosaic_0001>

<bundles_post_ra>
// kernel: tpu_custom_call.1
= control target key start
LH: loop header
LB: loop body
LE: loop exit
PB: predicated region body
PF: predicated region fallthrough
CT: control target
= control target key end

     0   :  { %7 = vsyncpa [#allocation3], 0  ;;  %s233_s0 = inlined_call_operand.hbm [shape: f32[10,128], index: 0, kind: input, shape index: {}]   ;;  %s234_s1 = inlined_call_operand.hbm [shape: f32[10,128], index: 1, kind: input, shape index: {}]   ;;  %s235_s2 = inlined_call_operand.hbm [shape: f32[1,128], index: 2, kind: output, shape index: {}]  }
   0x1   :  { %8 = vsyncpa [#allocation6], 0 }
   0x2   :  { %9 = vsyncpa [#allocation4], 0  ;;  %s14_s11 = sshll.u32 %s233_s0, 4  ;;  %s204_s12 = smov [#allocation2]   ;;  %s15_s11 = int_to_ptr.hbm [resolvable:$true] %s14_s11 }
   0x3   :  { %s16_s13 = sshll.u32 %s204_s12, 4  ;;  %s27_s16 = sshll.u32 %s234_s1, 4  ;;  %s17_s13 = int_to_ptr.vmem [resolvable:$true] %s16_s13  ;;  %s28_s16 = int_to_ptr.hbm [resolvable:$true] %s27_s16 }
   0x4   :  { %s205_s17 = smov 128   ;;  %s206_s18 = smov 8  }
   0x5   :  { %22 = dma.hbm_to_vmem [thread:$0]  %s15_s11, 256, %s17_s13, [#allocation3], %s205_s17, %s205_s17, %s206_s18  }
   0x6   :  { %s207_s19 = smov [#allocation5]  }
   0x7   :  { %s29_s20 = sshll.u32 %s207_s19, 4  ;;  %s30_s20 = int_to_ptr.vmem [resolvable:$true] %s29_s20 }
   0x8   :  { %35 = dma.hbm_to_vmem [thread:$0]  %s28_s16, 256, %s30_s20, [#allocation6], %s205_s17, %s205_s17, %s206_s18  }
   0x9   :  { %198 = dma.done.wait [#allocation3], 256  }
   0xa   :  { %199 = vsyncadd [#allocation3], 4294967040 }
   0xb   :  { %200 = dma.done.wait [#allocation6], 256  }
   0xc   :  { %201 = vsyncadd [#allocation6], 4294967040  ;;  %v44_v0 = vld [vmem:[#allocation2] sm:$0xff]  ;;  %v45_v1 = vld [vmem:[#allocation2 + $0x8] sm:$0x3]  ;;  %vm80_vm0 = vcmask 1041408  }
   0xd   :  { %v46_v2 = vld [vmem:[#allocation5] sm:$0xff]  ;;  %v47_v3 = vld [vmem:[#allocation5 + $0x8] sm:$0x3]  ;;  %v58_v5 = vadd.f32 1e-10, %v44_v0  ;;  %s208_s0 = smov [#allocation7]  }
   0xe   :  { %v48_v4 = vadd.f32 %v46_v2, %v44_v0  ;;  %v59_v6 = vadd.f32 1e-10, %v45_v1  ;;  %v49_v7 = vadd.f32 %v47_v3, %v45_v1  ;;  %v68_v8 = vadd.f32 1e-10, %v46_v2  ;;  %s96_s1 = sshll.u32 %s208_s0, 4  ;;  %s98_s23 = sshll.u32 %s235_s2, 4  ;;  %s97_s1 = int_to_ptr.vmem [resolvable:$true] %s96_s1  ;;  %s99_s23 = int_to_ptr.hbm [resolvable:$true] %s98_s23 }
   0xf   :  { %v69_v9 = vadd.f32 1e-10, %v47_v3  ;;  %114 = vlog2.f32 %v58_v5 }
  0x10   :  { %v50_v10 = vmul.f32 0.5, %v48_v4  ;;  %v51_v11 = vmul.f32 0.5, %v49_v7  ;;  %116 = vlog2.f32 %v59_v6 }
  0x11   :  { %118 = vlog2.f32 %v68_v8 }
  0x12   :  { %v52_v12 = vadd.f32 1e-10, %v50_v10  ;;  %v53_v13 = vadd.f32 1e-10, %v51_v11  ;;  %120 = vlog2.f32 %v69_v9 }
  0x14   :  { %122 = vlog2.f32 %v52_v12 }
  0x15   :  { %124 = vlog2.f32 %v53_v13  ;;  %v115_v14 = vpop.eup %114 }
  0x16   :  { %v117_v15 = vpop.eup %116  ;;  %v61_v18 = vmul.f32 0.6931472, %v115_v14 }
  0x17   :  { %v119_v16 = vpop.eup %118  ;;  %v63_v21 = vmul.f32 0.6931472, %v117_v15 }
  0x18   :  { %v121_v17 = vpop.eup %120  ;;  %v71_v19 = vmul.f32 0.6931472, %v119_v16 }
  0x19   :  { %v73_v22 = vmul.f32 0.6931472, %v121_v17 }
  0x1a   :  { %v123_v20 = vpop.eup %122 }
  0x1b   :  { %v125_v23 = vpop.eup %124  ;;  %v55_v24 = vmul.f32 0.6931472, %v123_v20 }
  0x1c   :  { %v57_v25 = vmul.f32 0.6931472, %v125_v23 }
  0x1d   :  { %v64_v26 = vsub.f32 %v61_v18, %v55_v24  ;;  %v74_v27 = vsub.f32 %v71_v19, %v55_v24 }
  0x1e   :  { %v65_v28 = vsub.f32 %v63_v21, %v57_v25  ;;  %v75_v29 = vsub.f32 %v73_v22, %v57_v25 }
  0x1f   :  { %v66_v30 = vmul.f32 %v64_v26, %v44_v0  ;;  %v76_v31 = vmul.f32 %v74_v27, %v46_v2 }
  0x20   :  { %v67_v32 = vmul.f32 %v65_v28, %v45_v1  ;;  %v77_v33 = vmul.f32 %v75_v29, %v47_v3 }
  0x21   :  { %v78_v34 = vadd.f32 %v76_v31, %v66_v30 }
  0x22   :  { %v79_v35 = vadd.f32 %v77_v33, %v67_v32 }
  0x24   :  { %v81_v36 = vsel %vm80_vm0, %v79_v35, 0.0 }
  0x25   :  { %v82_v37 = vadd.f32 %v81_v36, %v78_v34 }
  0x27   :  { %v83_v38 = vrot.slane %v82_v37, 4 }
  0x29   :  { %v84_v39 = vadd.f32 %v83_v38, %v82_v37 }
  0x2b   :  { %v85_v40 = vrot.slane %v84_v39, 2 }
  0x2d   :  { %v86_v41 = vadd.f32 %v85_v40, %v84_v39 }
  0x2f   :  { %v87_v42 = vrot.slane %v86_v41, 1 }
  0x31   :  { %v88_v43 = vadd.f32 %v87_v42, %v86_v41 }
  0x33   :  { %v89_v44 = vmul.f32 0.5, %v88_v43 }
  0x35   :  { %90 = vst [vmem:[#allocation7] sm:$0x1] %v89_v44 }
  0x36   :  { %101 = dma.vmem_to_hbm [thread:$0]  %s97_s1, 16, %s99_s23, [#allocation4]  }
  0x37   :  { %202 = dma.done.wait [#allocation4], 16  }
  0x38   :  { %203 = vsyncadd [#allocation4], 4294967280 }
  0x39   :  { %106 = vsyncpa [#allocation3], 1 }
  0x3a   :  { %107 = vsyncpa [#allocation6], 1 }
  0x3b   :  { %108 = vsyncpa [#allocation4], 1 }

</bundles_post_ra>
